<compile_context>
chip_gen: v7x
topology: tpu7x:2x2x1
jax: 0.10.0
libtpu: 0.0.40
codegen_flags: <defaults>
</compile_context>

<pallas_src>
import jax
import jax.numpy as jnp
from jax import lax
from jax.experimental import pallas as pl
from jax.experimental.pallas import tpu as pltpu


def _round_up(x, m):
    return ((x + m - 1) // m) * m


_VMEM_LIMIT_BYTES = 32 * 1024 * 1024      # explicit scoped limit; safe on v5e/v6e/v7x
_VMEM_TILE_BUDGET = 24 * 1024 * 1024      # headroom used when picking tile_n


def _vmem_estimate(tile_n, tile_k, tile_out, in_bytes):
    """Bytes of VMEM the pipeline needs (double-buffered operands + accumulator)."""
    x_t = tile_n * tile_k * in_bytes
    w_t = tile_out * tile_k * in_bytes
    b_t = tile_out * 4
    o_t = tile_n * tile_out * 4
    acc = tile_n * tile_out * 4
    return 2 * (x_t + w_t + b_t + o_t) + acc


def node_apply(x, weight, bias, activation=jax.nn.relu, *,
               compute_dtype=jnp.bfloat16, tile_out=128, max_tile_k=256):
    """GCN NodeApplyModule forward: activation(x @ weight.T + bias).

    x:      (N, in_feats)
    weight: (out_feats, in_feats)   nn.Linear layout (NOT transposed here)
    bias:   (out_feats,)
    """
    N, in_feats = x.shape
    out_feats, in_feats_w = weight.shape
    assert in_feats_w == in_feats, "weight/in_feats mismatch"
    out_dtype = x.dtype
    in_bytes = jnp.dtype(compute_dtype).itemsize

    # --- K (in_feats) tiling ------------------------------------------------
    if in_feats <= 2 * max_tile_k:
        tile_k, k_pad = in_feats, in_feats            # single K step
    else:
        tile_k = max_tile_k
        k_pad = _round_up(in_feats, tile_k)

    # --- out_feats: pad to a lane-dense multiple of 128 ----------------------
    out_pad = _round_up(out_feats, 128)
    tile_out = min(tile_out, out_pad)

    # --- row tiling: largest tile that fits the VMEM budget ------------------
    tile_n = 16
    for cand in (2048, 1024, 512, 256, 128, 64, 32, 16):
        if _vmem_estimate(cand, tile_k, tile_out, in_bytes) <= _VMEM_TILE_BUDGET:
            tile_n = cand
            break
    tile_n = min(tile_n, _round_up(N, 16))            # don't over-pad tiny N
    n_pad = _round_up(N, tile_n)

    # --- wrapper-side zero padding (zeros are exact; K-pad contributes 0) ----
    # TODO(synk): for MB-scale weights, pre-store the padded/compute-dtype weight
    # once instead of padding + casting per call (avoids an extra HBM pass).
    x_p = x
    if n_pad != N or k_pad != in_feats:
        x_p = jnp.pad(x, ((0, n_pad - N), (0, k_pad - in_feats)))
    w_p = weight
    if out_pad != out_feats or k_pad != in_feats:
        w_p = jnp.pad(weight, ((0, out_pad - out_feats), (0, k_pad - in_feats)))
    b_p = bias
    if out_pad != out_feats:
        b_p = jnp.pad(bias, (0, out_pad - out_feats))
    b_p = b_p.reshape(1, out_pad).astype(jnp.float32)

    x_p = x_p.astype(compute_dtype)
    w_p = w_p.astype(compute_dtype)

    grid = (n_pad // tile_n, out_pad // tile_out, k_pad // tile_k)
    last_k = grid[2] - 1

    def kernel(x_ref, w_ref, b_ref, o_ref, acc_ref):
        k = pl.program_id(2)

        @pl.when(k == 0)
        def _():
            acc_ref[...] = jnp.zeros_like(acc_ref)

        # (tile_n, tile_k) . (tile_out, tile_k) contracted on K: the MXU takes the
        # transposed RHS for free, so no wrapper-side weight.T materialization.
        acc_ref[...] += lax.dot_general(
            x_ref[...], w_ref[...],
            dimension_numbers=(((1,), (1,)), ((), ())),
            preferred_element_type=jnp.float32)

        @pl.when(k == last_k)
        def _():
            h = acc_ref[...] + b_ref[...]        # bias add in f32
            h = activation(h)                    # activation in f32
            o_ref[...] = h.astype(o_ref.dtype)   # single cast at the final store

    flops = 2 * N * in_feats * out_feats
    bytes_accessed = (x_p.size * in_bytes + w_p.size * in_bytes + b_p.size * 4
                      + n_pad * out_pad * jnp.dtype(out_dtype).itemsize)

    out = pl.pallas_call(
        kernel,
        out_shape=jax.ShapeDtypeStruct((n_pad, out_pad), out_dtype),
        grid_spec=pltpu.PrefetchScalarGridSpec(
            num_scalar_prefetch=0,
            grid=grid,
            in_specs=[
                pl.BlockSpec((tile_n, tile_k), lambda i, j, k: (i, k)),
                pl.BlockSpec((tile_out, tile_k), lambda i, j, k: (j, k)),
                pl.BlockSpec((1, tile_out), lambda i, j, k: (0, j)),
            ],
            out_specs=pl.BlockSpec((tile_n, tile_out), lambda i, j, k: (i, j)),
            scratch_shapes=[pltpu.VMEM((tile_n, tile_out), jnp.float32)],
        ),
        compiler_params=pltpu.CompilerParams(
            # row/out tiles parallel (megacore on v7x), K reduction trailing/arbitrary
            dimension_semantics=("parallel", "parallel", "arbitrary"),
            vmem_limit_bytes=_VMEM_LIMIT_BYTES,
        ),
        cost_estimate=pl.CostEstimate(
            flops=flops, transcendentals=0, bytes_accessed=bytes_accessed),
    )(x_p, w_p, b_p)

    return out[:N, :out_feats]


if __name__ == "__main__":
    # Small shapes consistent with the module: N nodes, in_feats -> out_feats.
    N, in_feats, out_feats = 128, 32, 16

    key = jax.random.PRNGKey(0)
    kx, kw, kb = jax.random.split(key, 3)

    x = jax.random.normal(kx, (N, in_feats), dtype=jnp.float32)
    bound = 1.0 / (in_feats ** 0.5)
    weight = jax.random.uniform(kw, (out_feats, in_feats),
                                minval=-bound, maxval=bound, dtype=jnp.float32)
    bias = jax.random.uniform(kb, (out_feats,),
                              minval=-bound, maxval=bound, dtype=jnp.float32)

    # Plain-JAX reference (same semantics as torch Linear + ReLU).
    ref = jnp.maximum(x @ weight.T + bias, 0.0)

    # f32 compute path: bit-faithful to the torch module.
    out_f32 = jax.block_until_ready(
        node_apply(x, weight, bias, compute_dtype=jnp.float32))
    assert out_f32.shape == (N, out_feats)
    assert jnp.allclose(out_f32, ref, atol=1e-5, rtol=1e-5)

    # Default bf16-input path (HBM-bandwidth optimization; f32 accumulation).
    out_bf16 = jax.block_until_ready(node_apply(x, weight, bias))
    assert out_bf16.shape == (N, out_feats)
    assert jnp.allclose(out_bf16, ref, atol=2e-2, rtol=2e-2)

    # Ragged N (exercises the padded / non-divisible-tile path).
    x2 = x[:100]
    out2 = jax.block_until_ready(
        node_apply(x2, weight, bias, compute_dtype=jnp.float32))
    assert out2.shape == (100, out_feats)
    assert jnp.allclose(out2, ref[:100], atol=1e-5, rtol=1e-5)

    print("KERNEL_OK")
</pallas_src>

<mosaic_0001>
module attributes {stable_mosaic.version = 11 : i64} {
  func.func @kernel(%arg0: i32, %arg1: i32, %arg2: i32, %arg3: memref<128x32xf32, #tpu.memory_space<vmem>>, %arg4: memref<128x32xf32, #tpu.memory_space<vmem>>, %arg5: memref<1x128xf32, #tpu.memory_space<vmem>>, %arg6: memref<128x128xf32, #tpu.memory_space<vmem>>, %arg7: memref<128x128xf32, #tpu.memory_space<vmem>>) attributes {dimension_semantics = [#tpu.dimension_semantics<parallel>, #tpu.dimension_semantics<parallel>, #tpu.dimension_semantics<arbitrary>], iteration_bounds = array<i64: 1, 1, 1>, scalar_prefetch = 0 : i64, scratch_operands = 1 : i64, tpu.core_type = #tpu.core_type<tc>, window_params = [{transform_indices = @transform_0, window_bounds = array<i64: 128, 32>}, {transform_indices = @transform_1, window_bounds = array<i64: 128, 32>}, {transform_indices = @transform_2, window_bounds = array<i64: 1, 128>}, {transform_indices = @transform_3, window_bounds = array<i64: 128, 128>}]} {
    %c0_i32 = arith.constant 0 : i32
    %0 = arith.cmpi eq, %arg2, %c0_i32 : i32
    %1 = arith.extui %0 : i1 to i32
    %c0_i32_0 = arith.constant 0 : i32
    %2 = arith.cmpi ne, %1, %c0_i32_0 : i32
    scf.if %2 {
      %cst_10 = arith.constant 0.000000e+00 : f32
      %12 = vector.broadcast %cst_10 : f32 to vector<128x128xf32>
      %c0_11 = arith.constant 0 : index
      %c0_12 = arith.constant 0 : index
      %13 = vector.load %arg7[%c0_11, %c0_12] : memref<128x128xf32, #tpu.memory_space<vmem>>, vector<128x128xf32>
      tpu.vector_store %arg7[%c0_11, %c0_12], %12 {strides = array<i32>} : memref<128x128xf32, #tpu.memory_space<vmem>>, vector<128x128xf32>,
    } else {
    }
    %c0 = arith.constant 0 : index
    %c0_1 = arith.constant 0 : index
    %3 = vector.load %arg7[%c0, %c0_1] : memref<128x128xf32, #tpu.memory_space<vmem>>, vector<128x128xf32>
    %c0_2 = arith.constant 0 : index
    %c0_3 = arith.constant 0 : index
    %4 = vector.load %arg3[%c0_2, %c0_3] : memref<128x32xf32, #tpu.memory_space<vmem>>, vector<128x32xf32>
    %c0_4 = arith.constant 0 : index
    %c0_5 = arith.constant 0 : index
    %5 = vector.load %arg4[%c0_4, %c0_5] : memref<128x32xf32, #tpu.memory_space<vmem>>, vector<128x32xf32>
    %cst = arith.constant dense<0.000000e+00> : vector<128x128xf32>
    %6 = tpu.matmul %4, %5, %cst {dimension_numbers = #tpu.dot_dimension_numbers<[1], [1], [0], [0], [0, 0, 1, 0], [], []>} : vector<128x32xf32>, vector<128x32xf32>, vector<128x128xf32> -> vector<128x128xf32>
    %7 = arith.addf %3, %6 : vector<128x128xf32>
    %c0_6 = arith.constant 0 : index
    %c0_7 = arith.constant 0 : index
    %8 = vector.load %arg7[%c0_6, %c0_7] : memref<128x128xf32, #tpu.memory_space<vmem>>, vector<128x128xf32>
    tpu.vector_store %arg7[%c0_6, %c0_7], %7 {strides = array<i32>} : memref<128x128xf32, #tpu.memory_space<vmem>>, vector<128x128xf32>,
    %c0_i32_8 = arith.constant 0 : i32
    %9 = arith.cmpi eq, %arg2, %c0_i32_8 : i32
    %10 = arith.extui %9 : i1 to i32
    %c0_i32_9 = arith.constant 0 : i32
    %11 = arith.cmpi ne, %10, %c0_i32_9 : i32
    scf.if %11 {
      %c0_10 = arith.constant 0 : index
      %c0_11 = arith.constant 0 : index
      %12 = vector.load %arg7[%c0_10, %c0_11] : memref<128x128xf32, #tpu.memory_space<vmem>>, vector<128x128xf32>
      %c0_12 = arith.constant 0 : index
      %c0_13 = arith.constant 0 : index
      %13 = vector.load %arg5[%c0_12, %c0_13] : memref<1x128xf32, #tpu.memory_space<vmem>>, vector<1x128xf32>
      %14 = vector.broadcast %13 : vector<1x128xf32> to vector<128x128xf32>
      %15 = arith.addf %12, %14 : vector<128x128xf32>
      %cst_14 = arith.constant 0.000000e+00 : f32
      %16 = vector.broadcast %cst_14 : f32 to vector<128x128xf32>
      %17 = arith.maximumf %15, %16 : vector<128x128xf32>
      %c0_15 = arith.constant 0 : index
      %c0_16 = arith.constant 0 : index
      %18 = vector.load %arg6[%c0_15, %c0_16] : memref<128x128xf32, #tpu.memory_space<vmem>>, vector<128x128xf32>
      tpu.vector_store %arg6[%c0_15, %c0_16], %17 {strides = array<i32>} : memref<128x128xf32, #tpu.memory_space<vmem>>, vector<128x128xf32>,
    } else {
    }
    return
  }
  func.func @transform_0(%arg0: i32, %arg1: i32, %arg2: i32) -> (i32, i32) {
    %c0_i32 = arith.constant 0 : i32
    return %arg0, %arg2 : i32, i32
  }
  func.func @transform_1(%arg0: i32, %arg1: i32, %arg2: i32) -> (i32, i32) {
    %c0_i32 = arith.constant 0 : i32
    return %arg1, %arg2 : i32, i32
  }
  func.func @transform_2(%arg0: i32, %arg1: i32, %arg2: i32) -> (i32, i32) {
    %c0_i32 = arith.constant 0 : i32
    %c0_i32_0 = arith.constant 0 : i32
    return %c0_i32, %arg1 : i32, i32
  }
  func.func @transform_3(%arg0: i32, %arg1: i32, %arg2: i32) -> (i32, i32) {
    %c0_i32 = arith.constant 0 : i32
    return %arg0, %arg1 : i32, i32
  }
}

</mosaic_0001>

<bundles_post_ra>
// kernel: tpu_custom_call.1
= control target key start
LH: loop header
LB: loop body
LE: loop exit
PB: predicated region body
PF: predicated region fallthrough
CT: control target
= control target key end

     0   :  { %vm83_vm0 = vcmask 261120   ;;  %s879_s0 = inlined_call_operand.vmem [shape: f32[128,32], index: 0, kind: input, shape index: {}]   ;;  %s880_s1 = inlined_call_operand.vmem [shape: f32[128,32], index: 1, kind: input, shape index: {}]   ;;  %s881_s2 = inlined_call_operand.vmem [shape: f32[1,128], index: 2, kind: input, shape index: {}]   ;;  %s882_s3 = inlined_call_operand.hbm [shape: f32[128,128], index: 3, kind: output, shape index: {}]  }
   0x1   :  { %v67_v0 = vld [vmem:[%s880_s1] sm:$0xff]  ;;  %v68_v1 = vld [vmem:[%s880_s1 + $0x8] sm:$0xff]  ;;  %v69_v2 = vld [vmem:[%s880_s1 + $0x10] sm:$0xff] }
   0x2   :  { %v568_v3 = vpack.c.bf16 %v68_v1, %v67_v0  ;;  %vm693_vm1 = vmpackc.low %vm83_vm0, %vm83_vm0  ;;  %v70_v5 = vld [vmem:[%s880_s1 + $0x18] sm:$0xff]  ;;  %v51_v7 = vld [vmem:[%s879_s0] sm:$0xff] }
   0x3   :  { %v574_v6 = vpack.c.bf16 %v70_v5, %v69_v2  ;;  %v71_v8 = vld [vmem:[%s880_s1 + $0x20] sm:$0xff]  ;;  %v72_v9 = vld [vmem:[%s880_s1 + $0x28] sm:$0xff]  ;;  %544 = vmatprep.mubr.msk.f32.mxu0 %vm83_vm0, %v51_v7 }
   0x4   :  { %570 = vmatprep.subr.msk.bf16.mxu0 %vm693_vm1, %v568_v3  ;;  %616 = vmatprep.subr.msk.bf16.mxu1 %vm693_vm1, %v568_v3  ;;  %v59_v10 = vld [vmem:[%s879_s0 + $0x40] sm:$0xff]  ;;  %v580_v11 = vpack.c.bf16 %v72_v9, %v71_v8 }
   0x5   :  { %573 = vmatpush3.bf16.xpose.msk.msra.mxu0 %vm693_vm1, %v568_v3  ;;  %624 = vmatpush3.bf16.xpose.msk.msra.mxu1 %vm693_vm1, %v568_v3 }
   0x6   :  { %576 = vmatprep.subr.msk.bf16.mxu0 %vm693_vm1, %v574_v6  ;;  %617 = vmatprep.subr.msk.bf16.mxu1 %vm693_vm1, %v574_v6 }
   0x7   :  { %556 = vmatprep.mubr.msk.f32.mxu1 %vm83_vm0, %v59_v10 }
   0x8   :  { %8 = vsyncpa [#allocation4], 0  ;;  %v73_v12 = vld [vmem:[%s880_s1 + $0x30] sm:$0xff]  ;;  %v74_v13 = vld [vmem:[%s880_s1 + $0x38] sm:$0xff] }
   0x9   :  { %v586_v14 = vpack.c.bf16 %v74_v13, %v73_v12  ;;  %v75_v15 = vld [vmem:[%s880_s1 + $0x40] sm:$0xff]  ;;  %v76_v16 = vld [vmem:[%s880_s1 + $0x48] sm:$0xff]  ;;  %v77_v18 = vld [vmem:[%s880_s1 + $0x50] sm:$0xff] }
   0xa   :  { %v592_v17 = vpack.c.bf16 %v76_v16, %v75_v15  ;;  %v78_v19 = vld [vmem:[%s880_s1 + $0x58] sm:$0xff]  ;;  %v79_v21 = vld [vmem:[%s880_s1 + $0x60] sm:$0xff]  ;;  %v80_v22 = vld [vmem:[%s880_s1 + $0x68] sm:$0xff] }
   0xb   :  { %v598_v20 = vpack.c.bf16 %v78_v19, %v77_v18  ;;  %v604_v23 = vpack.c.bf16 %v80_v22, %v79_v21  ;;  %v81_v24 = vld [vmem:[%s880_s1 + $0x70] sm:$0xff]  ;;  %v82_v25 = vld [vmem:[%s880_s1 + $0x78] sm:$0xff]  ;;  %v52_v27 = vld [vmem:[%s879_s0 + $0x8] sm:$0xff] }
   0xc   :  { %v610_v26 = vpack.c.bf16 %v82_v25, %v81_v24  ;;  %v60_v28 = vld [vmem:[%s879_s0 + $0x48] sm:$0xff]  ;;  %v53_v29 = vld [vmem:[%s879_s0 + $0x10] sm:$0xff]  ;;  %v54_v31 = vld [vmem:[%s879_s0 + $0x18] sm:$0xff] }
   0xd   :  { %579 = vmatpush3.bf16.xpose.msk.msra.mxu0 %vm693_vm1, %v574_v6  ;;  %625 = vmatpush3.bf16.xpose.msk.msra.mxu1 %vm693_vm1, %v574_v6  ;;  %v61_v30 = vld [vmem:[%s879_s0 + $0x50] sm:$0xff]  ;;  %v62_v32 = vld [vmem:[%s879_s0 + $0x58] sm:$0xff]  ;;  %v55_v33 = vld [vmem:[%s879_s0 + $0x20] sm:$0xff] }
   0xe   :  { %582 = vmatprep.subr.msk.bf16.mxu0 %vm693_vm1, %v580_v11  ;;  %618 = vmatprep.subr.msk.bf16.mxu1 %vm693_vm1, %v580_v11  ;;  %v63_v34 = vld [vmem:[%s879_s0 + $0x60] sm:$0xff]  ;;  %v56_v35 = vld [vmem:[%s879_s0 + $0x28] sm:$0xff]  ;;  %v57_v37 = vld [vmem:[%s879_s0 + $0x30] sm:$0xff] }
   0xf   :  { %v64_v36 = vld [vmem:[%s879_s0 + $0x68] sm:$0xff]  ;;  %v65_v38 = vld [vmem:[%s879_s0 + $0x70] sm:$0xff]  ;;  %v58_v39 = vld [vmem:[%s879_s0 + $0x38] sm:$0xff] }
  0x10   :  { %v66_v40 = vld [vmem:[%s879_s0 + $0x78] sm:$0xff]  ;;  %v479_v41 = vld [vmem:[%s881_s2] ss:$0 sm:$0xff]  ;;  %s659_s0 = smov [#allocation3]  }
  0x11   :  { %s436_s2 = sshll.u32 %s659_s0, 4  ;;  %s437_s2 = int_to_ptr.vmem [resolvable:$true] %s436_s2 }
  0x12   :  { %s635_s22 = scalar_lea.vmem %s437_s2, 2048  ;;  %p640_p1 = scmp.lt.s32.totalorder %s437_s2, %s437_s2 }
  0x13   :  { %p636_p0 = scmp.ne.s32.totalorder %s437_s2, %s635_s22  ;;  %p641_p2 = scmp.lt.s32.totalorder %s635_s22, %s635_s22 }
  0x15   :  { %585 = vmatpush3.bf16.xpose.msk.msra.mxu0 %vm693_vm1, %v580_v11  ;;  %626 = vmatpush3.bf16.xpose.msk.msra.mxu1 %vm693_vm1, %v580_v11  ;;  %p642_p3 = por %p641_p2, %p640_p1 }
  0x16   :  { %588 = vmatprep.subr.msk.bf16.mxu0 %vm693_vm1, %v586_v14  ;;  %619 = vmatprep.subr.msk.bf16.mxu1 %vm693_vm1, %v586_v14 }
  0x17   :  { %p643_p4 = pnand %p642_p3, %p636_p0 }
  0x1d   :  { %591 = vmatpush3.bf16.xpose.msk.msra.mxu0 %vm693_vm1, %v586_v14  ;;  %627 = vmatpush3.bf16.xpose.msk.msra.mxu1 %vm693_vm1, %v586_v14 }
  0x1e   :  { %594 = vmatprep.subr.msk.bf16.mxu0 %vm693_vm1, %v592_v17  ;;  %620 = vmatprep.subr.msk.bf16.mxu1 %vm693_vm1, %v592_v17 }
  0x25   :  { %597 = vmatpush3.bf16.xpose.msk.msra.mxu0 %vm693_vm1, %v592_v17  ;;  %628 = vmatpush3.bf16.xpose.msk.msra.mxu1 %vm693_vm1, %v592_v17 }
  0x26   :  { %600 = vmatprep.subr.msk.bf16.mxu0 %vm693_vm1, %v598_v20  ;;  %621 = vmatprep.subr.msk.bf16.mxu1 %vm693_vm1, %v598_v20 }
  0x2d   :  { %603 = vmatpush3.bf16.xpose.msk.msra.mxu0 %vm693_vm1, %v598_v20  ;;  %629 = vmatpush3.bf16.xpose.msk.msra.mxu1 %vm693_vm1, %v598_v20 }
  0x2e   :  { %606 = vmatprep.subr.msk.bf16.mxu0 %vm693_vm1, %v604_v23  ;;  %622 = vmatprep.subr.msk.bf16.mxu1 %vm693_vm1, %v604_v23 }
  0x35   :  { %609 = vmatpush3.bf16.xpose.msk.msra.mxu0 %vm693_vm1, %v604_v23  ;;  %630 = vmatpush3.bf16.xpose.msk.msra.mxu1 %vm693_vm1, %v604_v23 }
  0x36   :  { %612 = vmatprep.subr.msk.bf16.mxu0 %vm693_vm1, %v610_v26  ;;  %623 = vmatprep.subr.msk.bf16.mxu1 %vm693_vm1, %v610_v26 }
  0x3d   :  { %615 = vmatpush3.bf16.xpose.msk.msra.mxu0 %vm693_vm1, %v610_v26  ;;  %631 = vmatpush3.bf16.xpose.msk.msra.mxu1 %vm693_vm1, %v610_v26 }
  0x44   :  { %545 = vmatmul.mubr.msk.f32.vlgmr.msra.gmra.mrb[0].mxu0 %vm83_vm0, %v52_v27  ;;  %557 = vmatmul.mubr.msk.f32.vlgmr.msra.gmra.mrb[0].mxu1 %vm83_vm0, %v60_v28 }
  0x45   :  { %547 = vmatprep.mubr.msk.f32.mxu0 %vm83_vm0, %v53_v29  ;;  %559 = vmatprep.mubr.msk.f32.mxu1 %vm83_vm0, %v61_v30 }
  0x48   :  { %548 = vmatmul.mubr.msk.f32.gmra.mrb[2].mxu0 %vm83_vm0, %v54_v31  ;;  %560 = vmatmul.mubr.msk.f32.gmra.mrb[2].mxu1 %vm83_vm0, %v62_v32 }
  0x49   :  { %550 = vmatprep.mubr.msk.f32.mxu0 %vm83_vm0, %v55_v33  ;;  %562 = vmatprep.mubr.msk.f32.mxu1 %vm83_vm0, %v63_v34 }
  0x4c   :  { %551 = vmatmul.mubr.msk.f32.gmra.mrb[4].mxu0 %vm83_vm0, %v56_v35  ;;  %563 = vmatmul.mubr.msk.f32.gmra.mrb[4].mxu1 %vm83_vm0, %v64_v36 }
  0x4d   :  { %553 = vmatprep.mubr.msk.f32.mxu0 %vm83_vm0, %v57_v37  ;;  %565 = vmatprep.mubr.msk.f32.mxu1 %vm83_vm0, %v65_v38 }
  0x50   :  { %554 = vmatmul.mubr.msk.f32.gmra.mrb[6].mxu0 %vm83_vm0, %v58_v39  ;;  %566 = vmatmul.mubr.msk.f32.gmra.mrb[6].mxu1 %vm83_vm0, %v66_v40 }
 0x117   :  { %v546_v42 = vpop.f32.mrb[0].mxu0  ;;  %v558_v43 = vpop.f32.mrb[0].mxu1 }
 0x118   :  { %v384_v44 = vadd.f32 %v546_v42, %v479_v41  ;;  %v392_v45 = vadd.f32 %v558_v43, %v479_v41  ;;  %v246_v46 = vpop.f32.mrb[1].mxu0  ;;  %v286_v47 = vpop.f32.mrb[1].mxu1 }
 0x119   :  { %v383_v48 = vadd.f32 %v479_v41, %v246_v46  ;;  %v391_v49 = vadd.f32 %v479_v41, %v286_v47 }
 0x11a   :  { %v400_v50 = vmax.f32 %v384_v44, 0.0  ;;  %v408_v51 = vmax.f32 %v392_v45, 0.0 }
 0x11b   :  { %v399_v52 = vmax.f32 %v383_v48, 0.0  ;;  %v407_v53 = vmax.f32 %v391_v49, 0.0  ;;  %v549_v54 = vpop.f32.mrb[2].mxu0  ;;  %v561_v55 = vpop.f32.mrb[2].mxu1 }
 0x11c   :  { %416 = vst [vmem:[#allocation3 + $0x8] sm:$0xff] %v400_v50  ;;  %424 = vst [vmem:[#allocation3 + $0x48] sm:$0xff] %v408_v51  ;;  %v386_v56 = vadd.f32 %v549_v54, %v479_v41  ;;  %v394_v57 = vadd.f32 %v561_v55, %v479_v41  ;;  %v256_v58 = vpop.f32.mrb[3].mxu0  ;;  %v296_v59 = vpop.f32.mrb[3].mxu1 }
 0x11d   :  { %415 = vst [vmem:[#allocation3] sm:$0xff] %v399_v52  ;;  %423 = vst [vmem:[#allocation3 + $0x40] sm:$0xff] %v407_v53  ;;  %v385_v60 = vadd.f32 %v479_v41, %v256_v58  ;;  %v393_v61 = vadd.f32 %v479_v41, %v296_v59 }
 0x11e   :  { %v402_v62 = vmax.f32 %v386_v56, 0.0  ;;  %v410_v63 = vmax.f32 %v394_v57, 0.0 }
 0x11f   :  { %v401_v0 = vmax.f32 %v385_v60, 0.0  ;;  %v409_v1 = vmax.f32 %v393_v61, 0.0  ;;  %v552_v2 = vpop.f32.mrb[4].mxu0  ;;  %v564_v3 = vpop.f32.mrb[4].mxu1 }
 0x120   :  { %418 = vst [vmem:[#allocation3 + $0x18] sm:$0xff] %v402_v62  ;;  %426 = vst [vmem:[#allocation3 + $0x58] sm:$0xff] %v410_v63  ;;  %v388_v4 = vadd.f32 %v552_v2, %v479_v41  ;;  %v396_v5 = vadd.f32 %v564_v3, %v479_v41  ;;  %v266_v6 = vpop.f32.mrb[5].mxu0  ;;  %v306_v7 = vpop.f32.mrb[5].mxu1 }
 0x121   :  { %417 = vst [vmem:[#allocation3 + $0x10] sm:$0xff] %v401_v0  ;;  %425 = vst [vmem:[#allocation3 + $0x50] sm:$0xff] %v409_v1  ;;  %v387_v8 = vadd.f32 %v479_v41, %v266_v6  ;;  %v395_v9 = vadd.f32 %v479_v41, %v306_v7 }
 0x122   :  { %v404_v10 = vmax.f32 %v388_v4, 0.0  ;;  %v412_v11 = vmax.f32 %v396_v5, 0.0 }
 0x123   :  { %v403_v12 = vmax.f32 %v387_v8, 0.0  ;;  %v411_v13 = vmax.f32 %v395_v9, 0.0  ;;  %v555_v14 = vpop.f32.mrb[6].mxu0  ;;  %v567_v15 = vpop.f32.mrb[6].mxu1 }
 0x124   :  { %420 = vst [vmem:[#allocation3 + $0x28] sm:$0xff] %v404_v10  ;;  %428 = vst [vmem:[#allocation3 + $0x68] sm:$0xff] %v412_v11  ;;  %v390_v16 = vadd.f32 %v555_v14, %v479_v41  ;;  %v398_v17 = vadd.f32 %v567_v15, %v479_v41  ;;  %v276_v18 = vpop.f32.mrb[7].mxu0  ;;  %v316_v19 = vpop.f32.mrb[7].mxu1 }
 0x125   :  { %419 = vst [vmem:[#allocation3 + $0x20] sm:$0xff] %v403_v12  ;;  %427 = vst [vmem:[#allocation3 + $0x60] sm:$0xff] %v411_v13  ;;  %v389_v20 = vadd.f32 %v479_v41, %v276_v18  ;;  %v397_v21 = vadd.f32 %v479_v41, %v316_v19 }
 0x126   :  { %v406_v22 = vmax.f32 %v390_v16, 0.0  ;;  %v414_v23 = vmax.f32 %v398_v17, 0.0 }
 0x127   :  { %v405_v24 = vmax.f32 %v389_v20, 0.0  ;;  %v413_v25 = vmax.f32 %v397_v21, 0.0 }
 0x128   :  { %422 = vst [vmem:[#allocation3 + $0x38] sm:$0xff] %v406_v22  ;;  %430 = vst [vmem:[#allocation3 + $0x78] sm:$0xff] %v414_v23 }
 0x129   :  { %421 = vst [vmem:[#allocation3 + $0x30] sm:$0xff] %v405_v24  ;;  %429 = vst [vmem:[#allocation3 + $0x70] sm:$0xff] %v413_v25 }
 0x12a   :  { %646 = shalt.err (!%p643_p4)
}
 0x12b   :  { %s647_s25 = scalar_lea.hbm %s882_s3, 2048 }
 0x12c   :  { %p648_p5 = scmp.ne.s32.totalorder %s882_s3, %s647_s25  ;;  %p651_p6 = scmp.lt.u32.totalorder %s647_s25, %s882_s3 }
 0x12e   :  { %p653_p7 = pnand %p651_p6, %p648_p5 }
 0x130   :  { %656 = shalt.err (!%p653_p7)
}
 0x131   :  { %s660_s30 = smov 128   ;;  %s661_s4 = smov 8  }
 0x132   :  { %442 = dma.vmem_to_hbm [thread:$0]  %s437_s2, 2048, %s882_s3, [#allocation4], %s660_s30, %s660_s30, %s661_s4  }
 0x133   :  { %657 = dma.done.wait [#allocation4], 2048  }
 0x134   :  { %658 = vsyncadd [#allocation4], 4294965248 }
 0x135   :  { %446 = vsyncpa [#allocation4], 1 }

</bundles_post_ra>
